<compile_context>
chip_gen: v6e
topology: v6e:2x2x1
jax: 0.10.0
libtpu: 0.0.40
codegen_flags: <defaults>
</compile_context>

<pallas_src>
import functools
import math

import jax
import jax.numpy as jnp
import numpy as np
from jax import lax
from jax.experimental import pallas as pl
from jax.experimental.pallas import tpu as pltpu


# Scoped-VMEM budget: safe on v5e/v6e (128 MiB physical). On v7x (64 MiB
# physical) shrink the tile targets below rather than raising this.
_VMEM_LIMIT = 64 * 1024 * 1024

# Tile targets (per-generation guidance):
#   v6e: LIN (256, 512, 512), ATTN tq=tkv=256
#   v7x: LIN (256, 256, 256..512), ATTN tq=tkv=128..256 (64 MiB VMEM/TC)
#   v5e: LIN (128..256, 128..256, 256), ATTN tq=tkv=128..256
_LIN_TM, _LIN_TN, _LIN_TK = 256, 512, 512
_ATTN_TQ, _ATTN_TKV = 256, 256


def _pick_tile(dim, target):
    """Largest power-of-two-descended tile <= target that divides dim (else dim)."""
    t = min(dim, target)
    while t > 1 and dim % t != 0:
        t //= 2
    if t < 8 and t != dim:
        return dim
    return t


# ----------------------------------------------------------------------------
# Tiled linear projection kernel (qkv_proj and o_proj hot path)
# ----------------------------------------------------------------------------
def _linear_kernel(x_ref, w_ref, o_ref, acc_ref):
    @pl.when(pl.program_id(2) == 0)
    def _init():
        acc_ref[...] = jnp.zeros_like(acc_ref)

    # bf16 operands on the MXU, f32 accumulation.
    acc_ref[...] += jnp.dot(
        x_ref[...].astype(jnp.bfloat16),
        w_ref[...].astype(jnp.bfloat16),
        preferred_element_type=jnp.float32,
    )

    @pl.when(pl.program_id(2) == pl.num_programs(2) - 1)
    def _writeback():
        o_ref[...] = acc_ref[...].astype(o_ref.dtype)


def pallas_linear(x2d, w, *, tm=_LIN_TM, tn=_LIN_TN, tk=_LIN_TK):
    """x2d: (M, K) f32, w: (K, N) f32 -> (M, N) f32."""
    M, K = x2d.shape
    K2, N = w.shape
    assert K == K2
    tm, tn, tk = _pick_tile(M, tm), _pick_tile(N, tn), _pick_tile(K, tk)
    grid = (M // tm, N // tn, K // tk)
    cost = pl.CostEstimate(
        flops=2 * M * N * K,
        transcendentals=0,
        bytes_accessed=4 * (M * K + K * N + M * N),
    )
    return pl.pallas_call(
        _linear_kernel,
        out_shape=jax.ShapeDtypeStruct((M, N), x2d.dtype),
        grid=grid,
        in_specs=[
            pl.BlockSpec((tm, tk), lambda i, j, k: (i, k)),
            pl.BlockSpec((tk, tn), lambda i, j, k: (k, j)),
        ],
        out_specs=pl.BlockSpec((tm, tn), lambda i, j, k: (i, j)),
        scratch_shapes=[pltpu.VMEM((tm, tn), jnp.float32)],
        compiler_params=pltpu.CompilerParams(
            dimension_semantics=("parallel", "parallel", "arbitrary"),
            vmem_limit_bytes=_VMEM_LIMIT,
        ),
        cost_estimate=cost,
    )(x2d, w)


# ----------------------------------------------------------------------------
# Flash attention kernel: RoPE + causal online-softmax SDPA
#   grid = (batch, q_tiles, kv_tiles); heads handled as lane slices inside the
#   kernel so q/k/v and the output stay in (B, S, H) layout (no HBM transposes).
# ----------------------------------------------------------------------------
def _flash_attn_kernel(q_ref, k_ref, v_ref, cos_q_ref, sin_q_ref,
                       cos_k_ref, sin_k_ref, o_ref,
                       qrot_sc, m_sc, l_sc, acc_sc,
                       *, num_heads, head_dim, tq, tkv, scale):
    qi = pl.program_id(1)
    ki = pl.program_id(2)
    n_kv = pl.num_programs(2)
    half = head_dim // 2
    q_start = qi * tq
    kv_start = ki * tkv

    @pl.when(ki == 0)
    def _init():
        m_sc[...] = jnp.full_like(m_sc, -jnp.inf)
        l_sc[...] = jnp.zeros_like(l_sc)
        acc_sc[...] = jnp.zeros_like(acc_sc)
        # RoPE the q tile once per q block (sign folded into sin_signed),
        # fold the softmax scale into q, and stash it as bf16 for the MXU.
        cos_q = cos_q_ref[...]
        sin_q = sin_q_ref[...]
        q_all = q_ref[...].astype(jnp.float32)                       # (tq, H)
        for h in range(num_heads):
            q_h = q_all[:, h * head_dim:(h + 1) * head_dim]
            q_rot = q_h * cos_q + pltpu.roll(q_h, shift=half, axis=1) * sin_q
            qrot_sc[h] = (q_rot * scale).astype(jnp.bfloat16)

    # Causal block skip: kv tiles entirely above the diagonal do no compute.
    @pl.when(kv_start <= q_start + (tq - 1))
    def _compute():
        cos_k = cos_k_ref[...]
        sin_k = sin_k_ref[...]
        k_all = k_ref[...].astype(jnp.float32)                       # (tkv, H)
        v_all = v_ref[...].astype(jnp.bfloat16)                      # (tkv, H)
        row = q_start + lax.broadcasted_iota(jnp.int32, (tq, tkv), 0)
        col = kv_start + lax.broadcasted_iota(jnp.int32, (tq, tkv), 1)
        causal = col <= row
        for h in range(num_heads):
            k_h = k_all[:, h * head_dim:(h + 1) * head_dim]
            k_rot = (k_h * cos_k
                     + pltpu.roll(k_h, shift=half, axis=1) * sin_k
                     ).astype(jnp.bfloat16)
            v_h = v_all[:, h * head_dim:(h + 1) * head_dim]
            # s = (q * scale) @ k^T via dot_general (no explicit transpose).
            s = lax.dot_general(
                qrot_sc[h], k_rot, (((1,), (1,)), ((), ())),
                preferred_element_type=jnp.float32)                  # (tq, tkv)
            s = jnp.where(causal, s, -1e30)

            m_prev = m_sc[h]                                         # (tq, 1)
            m_new = jnp.maximum(m_prev, jnp.max(s, axis=-1, keepdims=True))
            alpha = jnp.exp(m_prev - m_new)
            p = jnp.exp(s - m_new)
            l_sc[h] = alpha * l_sc[h] + jnp.sum(p, axis=-1, keepdims=True)
            acc_sc[h] = alpha * acc_sc[h] + jnp.dot(
                p.astype(jnp.bfloat16), v_h,
                preferred_element_type=jnp.float32)
            m_sc[h] = m_new

    @pl.when(ki == n_kv - 1)
    def _finalize():
        for h in range(num_heads):
            inv_l = pl.reciprocal(l_sc[h], approx=True)              # EUP slot
            o_ref[:, h * head_dim:(h + 1) * head_dim] = (
                acc_sc[h] * inv_l).astype(o_ref.dtype)


def pallas_flash_attention(q, k, v, cos, sin_signed, num_heads,
                           *, tq=_ATTN_TQ, tkv=_ATTN_TKV):
    """q, k, v: (B, S, H) head-interleaved; cos/sin_signed: (S, D). -> (B, S, H)."""
    B, S, H = q.shape
    D = H // num_heads
    tq = _pick_tile(S, tq)
    tkv = _pick_tile(S, tkv)
    n_q, n_kv = S // tq, S // tkv
    scale = 1.0 / math.sqrt(D)

    kernel = functools.partial(
        _flash_attn_kernel, num_heads=num_heads, head_dim=D,
        tq=tq, tkv=tkv, scale=scale)

    q_spec = pl.BlockSpec((None, tq, H), lambda b, qi, ki: (b, qi, 0))
    kv_spec = pl.BlockSpec((None, tkv, H), lambda b, qi, ki: (b, ki, 0))
    rot_q_spec = pl.BlockSpec((tq, D), lambda b, qi, ki: (qi, 0))
    rot_k_spec = pl.BlockSpec((tkv, D), lambda b, qi, ki: (ki, 0))

    cost = pl.CostEstimate(
        flops=2 * B * num_heads * S * S * D,            # causal ~halves 4*B*H*S^2*D
        transcendentals=B * num_heads * S * S // 2,
        bytes_accessed=4 * (4 * B * S * H + 4 * S * D),
    )

    return pl.pallas_call(
        kernel,
        out_shape=jax.ShapeDtypeStruct((B, S, H), q.dtype),
        grid=(B, n_q, n_kv),
        in_specs=[q_spec, kv_spec, kv_spec,
                  rot_q_spec, rot_q_spec, rot_k_spec, rot_k_spec],
        out_specs=pl.BlockSpec((None, tq, H), lambda b, qi, ki: (b, qi, 0)),
        scratch_shapes=[
            pltpu.VMEM((num_heads, tq, D), jnp.bfloat16),   # roped+scaled q
            pltpu.VMEM((num_heads, tq, 1), jnp.float32),    # running max m
            pltpu.VMEM((num_heads, tq, 1), jnp.float32),    # running sum l
            pltpu.VMEM((num_heads, tq, D), jnp.float32),    # output accumulator
        ],
        compiler_params=pltpu.CompilerParams(
            dimension_semantics=("parallel", "parallel", "arbitrary"),
            vmem_limit_bytes=_VMEM_LIMIT,
        ),
        cost_estimate=cost,
    )(q, k, v, cos, sin_signed, cos, sin_signed)


# ----------------------------------------------------------------------------
# Rotary embedding tables (Llama-style); rotate_half sign folded into sin.
# ----------------------------------------------------------------------------
def build_rotary(seq_len, dim, base=10000.0):
    inv_freq = 1.0 / (base ** (jnp.arange(0, dim, 2, dtype=jnp.float32) / dim))
    t = jnp.arange(seq_len, dtype=jnp.float32)
    freqs = jnp.outer(t, inv_freq)                       # (seq, dim/2)
    emb = jnp.concatenate([freqs, freqs], axis=-1)       # (seq, dim)
    cos = jnp.cos(emb)
    sin = jnp.sin(emb)
    half = dim // 2
    # rope(x) = x*cos + roll(x, half, lane)*sin_signed  ==  x*cos + rotate_half(x)*sin
    sin_signed = jnp.concatenate([-sin[:, :half], sin[:, half:]], axis=-1)
    return cos, sin_signed


# ----------------------------------------------------------------------------
# QuantLlamaAttention.forward (past_key_value=None, use_cache=False,
# output_attentions=False, position_ids = arange(q_len))
# ----------------------------------------------------------------------------
def quant_llama_attention_forward(hidden_states, w_qkv, w_o, num_heads):
    B, S, H = hidden_states.shape
    D = H // num_heads

    # qkv projection (tiled Pallas matmul)
    qkv = pallas_linear(hidden_states.reshape(B * S, H), w_qkv)      # (B*S, 3H)
    qkv = qkv.reshape(B, S, 3 * H)
    q, k, v = jnp.split(qkv, 3, axis=2)                               # (B, S, H) each

    cos, sin_signed = build_rotary(S, D)                              # (S, D)

    # RoPE + causal flash attention; heads stay interleaved on the lane axis,
    # output comes back lane-dense in (B, S, H) (no HBM transposes).
    attn = pallas_flash_attention(q, k, v, cos, sin_signed, num_heads)

    # output projection (tiled Pallas matmul)
    out = pallas_linear(attn.reshape(B * S, H), w_o).reshape(B, S, H)

    attn_weights = None          # output_attentions=False
    past_key_value = None        # use_cache=False
    return out, attn_weights, past_key_value


# ----------------------------------------------------------------------------
# Pure-JAX reference for verification
# ----------------------------------------------------------------------------
def reference_forward(hidden_states, w_qkv, w_o, num_heads):
    B, S, H = hidden_states.shape
    D = H // num_heads
    qkv = hidden_states.reshape(B * S, H) @ w_qkv
    qkv = qkv.reshape(B, S, 3 * H)
    q, k, v = jnp.split(qkv, 3, axis=2)
    sh = lambda t: t.reshape(B, S, num_heads, D).transpose(0, 2, 1, 3)
    q, k, v = sh(q), sh(k), sh(v)

    inv_freq = 1.0 / (10000.0 ** (jnp.arange(0, D, 2, dtype=jnp.float32) / D))
    t = jnp.arange(S, dtype=jnp.float32)
    freqs = jnp.outer(t, inv_freq)
    emb = jnp.concatenate([freqs, freqs], axis=-1)
    cos = jnp.cos(emb)[None, None]
    sin = jnp.sin(emb)[None, None]

    def rot_half(x):
        return jnp.concatenate([-x[..., D // 2:], x[..., :D // 2]], axis=-1)

    q = q * cos + rot_half(q) * sin
    k = k * cos + rot_half(k) * sin
    s = jnp.einsum("bhqd,bhkd->bhqk", q, k) / math.sqrt(D)
    mask = jnp.tril(jnp.ones((S, S), dtype=bool))
    s = jnp.where(mask[None, None], s, -1e30)
    p = jax.nn.softmax(s, axis=-1)
    o = jnp.einsum("bhqk,bhkd->bhqd", p, v)
    o = o.transpose(0, 2, 1, 3).reshape(B, S, H)
    return (o.reshape(B * S, H) @ w_o).reshape(B, S, H)


if __name__ == "__main__":
    # Small shapes consistent with the module: batch=2, seq=8, hidden=32, heads=4
    B, S, H, NH = 2, 8, 32, 4

    key = jax.random.PRNGKey(0)
    k_x, k_qkv, k_o = jax.random.split(key, 3)
    hidden_states = jax.random.normal(k_x, (B, S, H), dtype=jnp.float32)
    w_qkv = jax.random.normal(k_qkv, (H, 3 * H), dtype=jnp.float32) * 0.05
    w_o = jax.random.normal(k_o, (H, H), dtype=jnp.float32) * 0.05

    out, attn_w, past_kv = quant_llama_attention_forward(hidden_states, w_qkv, w_o, NH)
    out = jax.block_until_ready(out)

    ref = reference_forward(hidden_states, w_qkv, w_o, NH)
    np.testing.assert_allclose(np.asarray(out), np.asarray(ref), rtol=2e-2, atol=5e-3)

    assert out.shape == (B, S, H)
    assert attn_w is None and past_kv is None
    print("KERNEL_OK")
</pallas_src>

<mosaic_0001>
module attributes {stable_mosaic.version = 11 : i64} {
  func.func @_linear_kernel(%arg0: i32, %arg1: i32, %arg2: i32, %arg3: memref<16x32xf32, #tpu.memory_space<vmem>>, %arg4: memref<32x96xf32, #tpu.memory_space<vmem>>, %arg5: memref<16x96xf32, #tpu.memory_space<vmem>>, %arg6: memref<16x96xf32, #tpu.memory_space<vmem>>) attributes {dimension_semantics = [#tpu.dimension_semantics<parallel>, #tpu.dimension_semantics<parallel>, #tpu.dimension_semantics<arbitrary>], iteration_bounds = array<i64: 1, 1, 1>, scalar_prefetch = 0 : i64, scratch_operands = 1 : i64, tpu.core_type = #tpu.core_type<tc>, window_params = [{transform_indices = @transform_0, window_bounds = array<i64: 16, 32>}, {transform_indices = @transform_1, window_bounds = array<i64: 32, 96>}, {transform_indices = @transform_2, window_bounds = array<i64: 16, 96>}]} {
    %c0_i32 = arith.constant 0 : i32
    %0 = arith.cmpi eq, %arg2, %c0_i32 : i32
    %1 = arith.extui %0 : i1 to i32
    %c0_i32_0 = arith.constant 0 : i32
    %2 = arith.cmpi ne, %1, %c0_i32_0 : i32
    scf.if %2 {
      %cst_10 = arith.constant 0.000000e+00 : f32
      %14 = vector.broadcast %cst_10 : f32 to vector<16x96xf32>
      %c0_11 = arith.constant 0 : index
      %c0_12 = arith.constant 0 : index
      %15 = vector.load %arg6[%c0_11, %c0_12] : memref<16x96xf32, #tpu.memory_space<vmem>>, vector<16x96xf32>
      tpu.vector_store %arg6[%c0_11, %c0_12], %14 {strides = array<i32>} : memref<16x96xf32, #tpu.memory_space<vmem>>, vector<16x96xf32>,
    } else {
    }
    %c0 = arith.constant 0 : index
    %c0_1 = arith.constant 0 : index
    %3 = vector.load %arg6[%c0, %c0_1] : memref<16x96xf32, #tpu.memory_space<vmem>>, vector<16x96xf32>
    %c0_2 = arith.constant 0 : index
    %c0_3 = arith.constant 0 : index
    %4 = vector.load %arg3[%c0_2, %c0_3] : memref<16x32xf32, #tpu.memory_space<vmem>>, vector<16x32xf32>
    %5 = arith.truncf %4 : vector<16x32xf32> to vector<16x32xbf16>
    %c0_4 = arith.constant 0 : index
    %c0_5 = arith.constant 0 : index
    %6 = vector.load %arg4[%c0_4, %c0_5] : memref<32x96xf32, #tpu.memory_space<vmem>>, vector<32x96xf32>
    %7 = arith.truncf %6 : vector<32x96xf32> to vector<32x96xbf16>
    %cst = arith.constant dense<0.000000e+00> : vector<16x96xf32>
    %8 = tpu.matmul %5, %7, %cst {dimension_numbers = #tpu.dot_dimension_numbers<[1], [0], [0], [1], [0, 0, 1, 1], [], []>} : vector<16x32xbf16>, vector<32x96xbf16>, vector<16x96xf32> -> vector<16x96xf32>
    %9 = arith.addf %3, %8 : vector<16x96xf32>
    %c0_6 = arith.constant 0 : index
    %c0_7 = arith.constant 0 : index
    %10 = vector.load %arg6[%c0_6, %c0_7] : memref<16x96xf32, #tpu.memory_space<vmem>>, vector<16x96xf32>
    tpu.vector_store %arg6[%c0_6, %c0_7], %9 {strides = array<i32>} : memref<16x96xf32, #tpu.memory_space<vmem>>, vector<16x96xf32>,
    %c0_i32_8 = arith.constant 0 : i32
    %11 = arith.cmpi eq, %arg2, %c0_i32_8 : i32
    %12 = arith.extui %11 : i1 to i32
    %c0_i32_9 = arith.constant 0 : i32
    %13 = arith.cmpi ne, %12, %c0_i32_9 : i32
    scf.if %13 {
      %c0_10 = arith.constant 0 : index
      %c0_11 = arith.constant 0 : index
      %14 = vector.load %arg6[%c0_10, %c0_11] : memref<16x96xf32, #tpu.memory_space<vmem>>, vector<16x96xf32>
      %c0_12 = arith.constant 0 : index
      %c0_13 = arith.constant 0 : index
      %15 = vector.load %arg5[%c0_12, %c0_13] : memref<16x96xf32, #tpu.memory_space<vmem>>, vector<16x96xf32>
      tpu.vector_store %arg5[%c0_12, %c0_13], %14 {strides = array<i32>} : memref<16x96xf32, #tpu.memory_space<vmem>>, vector<16x96xf32>,
    } else {
    }
    return
  }
  func.func @transform_0(%arg0: i32, %arg1: i32, %arg2: i32) -> (i32, i32) {
    %c0_i32 = arith.constant 0 : i32
    return %arg0, %arg2 : i32, i32
  }
  func.func @transform_1(%arg0: i32, %arg1: i32, %arg2: i32) -> (i32, i32) {
    %c0_i32 = arith.constant 0 : i32
    return %arg2, %arg1 : i32, i32
  }
  func.func @transform_2(%arg0: i32, %arg1: i32, %arg2: i32) -> (i32, i32) {
    %c0_i32 = arith.constant 0 : i32
    return %arg0, %arg1 : i32, i32
  }
}

</mosaic_0001>

<bundles_post_ra>
// kernel: tpu_custom_call.1
= control target key start
LH: loop header
LB: loop body
LE: loop exit
PB: predicated region body
PF: predicated region fallthrough
CT: control target
= control target key end

     0   :  { %7 = vsyncpa [#allocation4], 0  ;;  %s265_s0 = inlined_call_operand.hbm [shape: f32[16,32], index: 0, kind: input, shape index: {}]   ;;  %s266_s1 = inlined_call_operand.hbm [shape: f32[32,96], index: 1, kind: input, shape index: {}]   ;;  %s267_s2 = inlined_call_operand.hbm [shape: f32[16,96], index: 2, kind: output, shape index: {}]  }
   0x1   :  { %8 = vsyncpa [#allocation7], 0 }
   0x2   :  { %9 = vsyncpa [#allocation5], 0  ;;  %s219_s9 = smov [#allocation3]  }
   0x3   :  { %s15_s10 = sshll.u32 %s219_s9, 4  ;;  %s16_s10 = int_to_ptr.vmem [resolvable:$true] %s15_s10 }
   0x4   :  { %s161_s11 = scalar_lea.vmem %s16_s10, 256  ;;  %p166_p1 = scmp.lt.s32.totalorder %s16_s10, %s16_s10 }
   0x5   :  { %p162_p0 = scmp.ne.s32.totalorder %s16_s10, %s161_s11  ;;  %p167_p2 = scmp.lt.s32.totalorder %s161_s11, %s161_s11 }
   0x7   :  { %p168_p3 = por %p167_p2, %p166_p1 }
   0x9   :  { %p169_p4 = pnand %p168_p3, %p162_p0 }
   0xb   :  { %172 = shalt.err (!%p169_p4)
}
   0xc   :  { %s220_s12 = smov 128   ;;  %s221_s13 = smov 8  }
   0xd   :  { %21 = dma.hbm_to_vmem [thread:$0]  %s265_s0, 256, %s16_s10, [#allocation4], %s220_s12, %s220_s12, %s221_s13  }
   0xe   :  { %s222_s16 = smov [#allocation6]  }
   0xf   :  { %s27_s17 = sshll.u32 %s222_s16, 4  ;;  %s28_s17 = int_to_ptr.vmem [resolvable:$true] %s27_s17 }
  0x10   :  { %s181_s18 = scalar_lea.vmem %s28_s17, 512  ;;  %p186_p6 = scmp.lt.s32.totalorder %s28_s17, %s28_s17 }
  0x11   :  { %p182_p5 = scmp.ne.s32.totalorder %s28_s17, %s181_s18  ;;  %p187_p7 = scmp.lt.s32.totalorder %s181_s18, %s181_s18 }
  0x13   :  { %p188_p8 = por %p187_p7, %p186_p6 }
  0x15   :  { %p189_p9 = pnand %p188_p8, %p182_p5 }
  0x17   :  { %192 = shalt.err (!%p189_p9)
}
  0x18   :  { %33 = dma.hbm_to_vmem [thread:$0]  %s266_s1, 512, %s28_s17, [#allocation7], %s220_s12, %s220_s12, %s221_s13  }
  0x19   :  { %213 = dma.done.wait [#allocation4], 256  }
  0x1a   :  { %214 = vsyncadd [#allocation4], 4294967040 }
  0x1b   :  { %215 = dma.done.wait [#allocation7], 512  }
  0x1c   :  { %216 = vsyncadd [#allocation7], 4294966784  ;;  %vm45_vm0 = vcmask 785408   ;;  %v223_v0 = vmov 0.0   ;;  %vm224_vm1 = vmmov 0   ;;  %v55_v1 = vld [vmem:[#allocation6 + $0x10] sm:$0xff] }
  0x1d   :  { %46 = vst.msk [vmem:[#allocation2] sm:$0xff] %vm45_vm0, %v223_v0  ;;  %47 = vst.msk [vmem:[#allocation2 + $0x8] sm:$0xff] %vm45_vm0, %v223_v0  ;;  %138 = vmatprep.subr.bf16.mxu0 %v223_v0  ;;  %142 = vmatprep.mubr.msk.bf16.mxu0 %vm224_vm1, %v223_v0  ;;  %v56_v2 = vld [vmem:[#allocation6 + $0x18] sm:$0xff]  ;;  %v53_v3 = vld [vmem:[#allocation6] sm:$0xff]  ;;  %vm59_vm2 = vcmask 261120   ;;  %s225_s0 = smov [#allocation8]  }
  0x1e   :  { %v58_v4 = vpack.c.bf16 %v56_v2, %v55_v1  ;;  %v54_v5 = vld [vmem:[#allocation6 + $0x8] sm:$0xff]  ;;  %v50_v7 = vld [vmem:[#allocation3] sm:$0xff]  ;;  %v51_v8 = vld [vmem:[#allocation3 + $0x8] sm:$0xff]  ;;  %s121_s1 = sshll.u32 %s225_s0, 4  ;;  %s122_s1 = int_to_ptr.vmem [resolvable:$true] %s121_s1 }
  0x1f   :  { %v57_v6 = vpack.c.bf16 %v54_v5, %v53_v3  ;;  %v52_v9 = vpack.c.bf16 %v51_v8, %v50_v7  ;;  %s193_s21 = scalar_lea.vmem %s122_s1, 256  ;;  %p198_p11 = scmp.lt.s32.totalorder %s122_s1, %s122_s1 }
  0x20   :  { %139 = vmatpush3.bf16.msra.mxu0 %v58_v4  ;;  %p194_p10 = scmp.ne.s32.totalorder %s122_s1, %s193_s21  ;;  %p199_p12 = scmp.lt.s32.totalorder %s193_s21, %s193_s21 }
  0x21   :  { %140 = vmatprep.subr.bf16.mxu0 %v223_v0 }
  0x22   :  { %p200_p13 = por %p199_p12, %p198_p11 }
  0x24   :  { %141 = vmatpush3.bf16.msra.mxu0 %v57_v6  ;;  %v48_v10 = vld [vmem:[#allocation2] sm:$0xff]  ;;  %v49_v14 = vld [vmem:[#allocation2 + $0x8] sm:$0xff]  ;;  %p201_p0 = pnand %p200_p13, %p194_p10 }
  0x27   :  { %143 = vmatmul.mubr.msk.bf16.vlgmr.msra.gmra.mxu0 %vm59_vm2, %v52_v9 }
  0xe7   :  { %v97_v11 = vpop.f32.mrf.mxu0 }
  0xe8   :  { %v104_v12 = vadd.f32 %v97_v11, %v48_v10 }
  0xe9   :  { %v144_v13 = vpop.f32.mrf.mxu0 }
  0xea   :  { %107 = vst.msk [vmem:[#allocation2] sm:$0xff] %vm45_vm0, %v104_v12 }
  0xeb   :  { %v100_v15 = vpop.f32.mrf.mxu0 }
  0xec   :  { %v105_v16 = vadd.f32 %v100_v15, %v49_v14 }
  0xed   :  { %v145_v17 = vpop.f32.mrf.mxu0 }
  0xee   :  { %108 = vst.msk [vmem:[#allocation2 + $0x8] sm:$0xff] %vm45_vm0, %v105_v16 }
  0xf1   :  { %v112_v18 = vld [vmem:[#allocation2] sm:$0xff] }
  0xf2   :  { %114 = vst.msk [vmem:[#allocation8] sm:$0xff] %vm45_vm0, %v112_v18 }
  0xf5   :  { %v113_v19 = vld [vmem:[#allocation2 + $0x8] sm:$0xff] }
  0xf6   :  { %115 = vst.msk [vmem:[#allocation8 + $0x8] sm:$0xff] %vm45_vm0, %v113_v19 }
  0xf7   :  { %204 = shalt.err (!%p201_p0)
}
  0xf8   :  { %127 = dma.vmem_to_hbm [thread:$0]  %s122_s1, 256, %s267_s2, [#allocation5], %s220_s12, %s220_s12, %s221_s13  }
  0xf9   :  { %217 = dma.done.wait [#allocation5], 256  }
  0xfa   :  { %218 = vsyncadd [#allocation5], 4294967040 }
  0xfb   :  { %131 = vsyncpa [#allocation4], 1 }
  0xfc   :  { %132 = vsyncpa [#allocation7], 1 }
  0xfd   :  { %133 = vsyncpa [#allocation5], 1 }

</bundles_post_ra>
